<compile_context>
chip_gen: v6e
topology: v6e:2x2x1
jax: 0.10.0
libtpu: 0.0.40
codegen_flags: <defaults>
</compile_context>

<pallas_src>
from functools import partial

import jax
import jax.numpy as jnp
from jax.experimental import pallas as pl
from jax.experimental.pallas import tpu as pltpu

_LANE = 128
_SUBLANE = 8


def _round_up(x, m):
    return ((x + m - 1) // m) * m


def _cdiv(a, b):
    return -(-a // b)


def _mlp_head_kernel(x_ref, w1_ref, b1_ref, w2_ref, b2_ref, w3_ref, b3_ref,
                     o_ref, *, sigmoid):
    # Transposed dataflow: x_ref is (f_in, TB), weights are (out, in),
    # activations are (h, TB), output is (num_out, TB) -- lane-dense in batch.
    x = x_ref[...]
    h = jnp.dot(w1_ref[...], x, preferred_element_type=jnp.float32)   # (h, TB)
    h = jnp.maximum(h + b1_ref[...], 0.0)                             # f32 bias+ReLU
    h = jnp.dot(w2_ref[...], h.astype(w2_ref.dtype),
                preferred_element_type=jnp.float32)                   # (h, TB)
    h = jnp.maximum(h + b2_ref[...], 0.0)
    y = jnp.dot(w3_ref[...], h.astype(w3_ref.dtype),
                preferred_element_type=jnp.float32) + b3_ref[...]      # (num_out, TB)
    if sigmoid:
        y = jax.nn.sigmoid(y)                                          # EUP, only num_out*TB
    o_ref[...] = y.astype(o_ref.dtype)


def _choose_batch_tiling(b, per_col_bytes, *, cap=2048,
                         tile_vmem_budget=12 * 1024 * 1024):
    """Pick (tb, n_tiles, b_pad) with tb a multiple of 128 (lane dim)."""
    max_tb = max(_LANE,
                 ((tile_vmem_budget // max(per_col_bytes, 1)) // _LANE) * _LANE)
    cap = max(_LANE, min(cap, max_tb))
    n_tiles = _cdiv(b, cap)
    # v7x megacore: an odd step count > 1 gives a 2:1 TensorCore imbalance.
    if n_tiles > 1 and n_tiles % 2 == 1:
        n_tiles += 1
    tb = _round_up(_cdiv(b, n_tiles), _LANE)
    return tb, n_tiles, n_tiles * tb


def mlp_head_forward(x_pooled, params, *, sigmoid=False, mxu_dtype=jnp.bfloat16):
    """x_pooled: (B, C, P) pooled features.  Returns (B, num_out).

    Weights follow the PyTorch nn.Linear layout: W (out_features, in_features),
    b (out_features,).  Note: with the default mxu_dtype=bfloat16 the input and
    weights are cast to bf16 for the MXU (accumulation and the bias/ReLU/sigmoid
    epilogue stay f32); pass mxu_dtype=None for a pure-f32 path.
    """
    B = x_pooled.shape[0]
    out_dtype = x_pooled.dtype
    w1, b1, w2, b2, w3, b3 = params
    h_size, f_in = w1.shape
    num_out = w3.shape[0]

    # Flatten(start_dim=-2), then transpose so batch is the lane (last) dim.
    xd = x_pooled.dtype if mxu_dtype is None else mxu_dtype
    x_t = x_pooled.reshape(B, f_in).T.astype(xd)                # (f_in, B)
    w1 = w1.astype(xd)
    w2 = w2.astype(xd)
    w3 = w3.astype(xd)
    b1 = b1.reshape(h_size, 1).astype(jnp.float32)
    b2 = b2.reshape(h_size, 1).astype(jnp.float32)
    b3 = b3.reshape(num_out, 1).astype(jnp.float32)

    x_itemsize = jnp.dtype(xd).itemsize
    out_itemsize = jnp.dtype(out_dtype).itemsize

    # --- batch tiling: pad B only up to the 128-lane granularity of the tiles.
    per_col = (2 * f_in * x_itemsize            # double-buffered x^T tile
               + 2 * num_out * out_itemsize     # double-buffered out tile
               + 4 * h_size * 4)                # f32 hidden activations (+ margin)
    tb, n_tiles, b_pad = _choose_batch_tiling(B, per_col)
    if b_pad != B:
        x_t = jnp.pad(x_t, ((0, 0), (0, b_pad - B)))            # zero cols, sliced off later
    grid = (n_tiles,)

    # --- VMEM estimate (double-buffered operands; biases lane-pad to 128 in VMEM).
    weight_vmem = 2 * (h_size * f_in + h_size * h_size + num_out * h_size) * x_itemsize
    bias_vmem = 2 * (2 * h_size + num_out) * _LANE * 4
    tile_vmem = 2 * tb * (f_in * x_itemsize + num_out * out_itemsize)
    act_vmem = 3 * tb * h_size * 4
    vmem_need = weight_vmem + bias_vmem + tile_vmem + act_vmem
    vmem_limit = int(min(48 * 1024 * 1024,
                         max(16 * 1024 * 1024, (3 * vmem_need) // 2)))

    weight_hbm = ((h_size * f_in + h_size * h_size + num_out * h_size) * x_itemsize
                  + (2 * h_size + num_out) * 4)
    flops = 2 * b_pad * (f_in * h_size + h_size * h_size + h_size * num_out)
    transcendentals = b_pad * num_out if sigmoid else 0
    bytes_accessed = (b_pad * f_in * x_itemsize + weight_hbm
                      + b_pad * num_out * out_itemsize)

    kernel = partial(_mlp_head_kernel, sigmoid=sigmoid)
    out = pl.pallas_call(
        kernel,
        out_shape=jax.ShapeDtypeStruct((num_out, b_pad), out_dtype),
        grid_spec=pltpu.PrefetchScalarGridSpec(
            num_scalar_prefetch=0,
            grid=grid,
            in_specs=[
                pl.BlockSpec((f_in, tb), lambda i: (0, i)),           # x^T tile (pipelined)
                pl.BlockSpec((h_size, f_in), lambda i: (0, 0)),       # W1 (resident)
                pl.BlockSpec((h_size, 1), lambda i: (0, 0)),          # b1
                pl.BlockSpec((h_size, h_size), lambda i: (0, 0)),     # W2
                pl.BlockSpec((h_size, 1), lambda i: (0, 0)),          # b2
                pl.BlockSpec((num_out, h_size), lambda i: (0, 0)),    # W3
                pl.BlockSpec((num_out, 1), lambda i: (0, 0)),         # b3
            ],
            out_specs=pl.BlockSpec((num_out, tb), lambda i: (0, i)),  # lane-dense in batch
        ),
        compiler_params=pltpu.CompilerParams(
            dimension_semantics=("parallel",),       # megacore-shardable on v7x
            vmem_limit_bytes=vmem_limit),
        cost_estimate=pl.CostEstimate(flops=flops,
                                      transcendentals=transcendentals,
                                      bytes_accessed=bytes_accessed),
    )(x_t, w1, b1, w2, b2, w3, b3)

    return out[:, :B].T                                  # (B, num_out); drop lane padding


def _init_linear(key, fan_in, fan_out, dtype=jnp.float32):
    # torch.nn.Linear layout and default init: W (out, in), b (out,),
    # U(-1/sqrt(fan_in), 1/sqrt(fan_in)).
    kw, kb = jax.random.split(key)
    bound = 1.0 / jnp.sqrt(fan_in)
    w = jax.random.uniform(kw, (fan_out, fan_in), dtype, -bound, bound)
    b = jax.random.uniform(kb, (fan_out,), dtype, -bound, bound)
    return w, b


def _reference(x_pooled, params, sigmoid):
    x = x_pooled.reshape(x_pooled.shape[0], -1)
    w1, b1, w2, b2, w3, b3 = params
    h = jnp.maximum(x @ w1.T + b1, 0.0)
    h = jnp.maximum(h @ w2.T + b2, 0.0)
    y = h @ w3.T + b3
    return jax.nn.sigmoid(y) if sigmoid else y


if __name__ == "__main__":
    # Shapes consistent with the module: in_channels=4, pool gives P=8 outputs
    # per channel, append_stats=False -> F = 32 ; h_size=32 ; num_out=1.
    B, C, P = 2, 4, 8
    h_size, num_out = 32, 1
    f_in = C * P

    key = jax.random.PRNGKey(0)
    kx, k1, k2, k3, kx2 = jax.random.split(key, 5)

    w1, b1 = _init_linear(k1, f_in, h_size)
    w2, b2 = _init_linear(k2, h_size, h_size)
    w3, b3 = _init_linear(k3, h_size, num_out)
    params = (w1, b1, w2, b2, w3, b3)

    x_pooled = jax.random.normal(kx, (B, C, P), jnp.float32)
    ref = _reference(x_pooled, params, False)

    # 1) pure-f32 path, tight tolerance: verifies the transposed dataflow exactly.
    out = jax.block_until_ready(
        mlp_head_forward(x_pooled, params, sigmoid=False, mxu_dtype=None))
    assert out.shape == (B, num_out)
    assert jnp.allclose(out, ref, atol=1e-5, rtol=1e-5)

    # 2) default path (bf16 MXU operands, f32 accumulate), small batch.
    out_bf = jax.block_until_ready(mlp_head_forward(x_pooled, params, sigmoid=False))
    assert out_bf.shape == (B, num_out)
    assert jnp.allclose(out_bf, ref, atol=3e-2, rtol=3e-2)

    # 3) larger, lane-unfriendly batch: exercises the batch tiling / ragged
    #    padding path and the sigmoid epilogue on the narrow (num_out, TB) slab.
    B2 = 1030
    x_pooled2 = jax.random.normal(kx2, (B2, C, P), jnp.float32)
    out2 = jax.block_until_ready(mlp_head_forward(x_pooled2, params, sigmoid=True))
    ref2 = _reference(x_pooled2, params, True)
    assert out2.shape == (B2, num_out)
    assert jnp.allclose(out2, ref2, atol=5e-2, rtol=5e-2)

    print("KERNEL_OK")
</pallas_src>

<mosaic_0001>
module attributes {stable_mosaic.version = 11 : i64} {
  func.func @_mlp_head_kernel(%arg0: i32, %arg1: memref<32x128xf32, #tpu.memory_space<vmem>>, %arg2: memref<32x32xf32, #tpu.memory_space<vmem>>, %arg3: memref<32x1xf32, #tpu.memory_space<vmem>>, %arg4: memref<32x32xf32, #tpu.memory_space<vmem>>, %arg5: memref<32x1xf32, #tpu.memory_space<vmem>>, %arg6: memref<1x32xf32, #tpu.memory_space<vmem>>, %arg7: memref<1x1xf32, #tpu.memory_space<vmem>>, %arg8: memref<1x128xf32, #tpu.memory_space<vmem>>) attributes {dimension_semantics = [#tpu.dimension_semantics<parallel>], iteration_bounds = array<i64: 1>, scalar_prefetch = 0 : i64, scratch_operands = 0 : i64, tpu.core_type = #tpu.core_type<tc>, window_params = [{transform_indices = @transform_0, window_bounds = array<i64: 32, 128>}, {pipeline_mode = #tpu.pipeline_mode<synchronous>, transform_indices = @transform_1, window_bounds = array<i64: 32, 32>}, {pipeline_mode = #tpu.pipeline_mode<synchronous>, transform_indices = @transform_2, window_bounds = array<i64: 32, 1>}, {pipeline_mode = #tpu.pipeline_mode<synchronous>, transform_indices = @transform_3, window_bounds = array<i64: 32, 32>}, {pipeline_mode = #tpu.pipeline_mode<synchronous>, transform_indices = @transform_4, window_bounds = array<i64: 32, 1>}, {pipeline_mode = #tpu.pipeline_mode<synchronous>, transform_indices = @transform_5, window_bounds = array<i64: 1, 32>}, {pipeline_mode = #tpu.pipeline_mode<synchronous>, transform_indices = @transform_6, window_bounds = array<i64: 1, 1>}, {transform_indices = @transform_7, window_bounds = array<i64: 1, 128>}]} {
    %c0 = arith.constant 0 : index
    %c0_0 = arith.constant 0 : index
    %0 = vector.load %arg1[%c0, %c0_0] : memref<32x128xf32, #tpu.memory_space<vmem>>, vector<32x128xf32>
    %c0_1 = arith.constant 0 : index
    %c0_2 = arith.constant 0 : index
    %1 = vector.load %arg2[%c0_1, %c0_2] : memref<32x32xf32, #tpu.memory_space<vmem>>, vector<32x32xf32>
    %cst = arith.constant dense<0.000000e+00> : vector<32x128xf32>
    %2 = tpu.matmul %1, %0, %cst {dimension_numbers = #tpu.dot_dimension_numbers<[1], [0], [0], [1], [0, 0, 1, 1], [], []>} : vector<32x32xf32>, vector<32x128xf32>, vector<32x128xf32> -> vector<32x128xf32>
    %c0_3 = arith.constant 0 : index
    %c0_4 = arith.constant 0 : index
    %3 = vector.load %arg3[%c0_3, %c0_4] : memref<32x1xf32, #tpu.memory_space<vmem>>, vector<32x1xf32>
    %4 = vector.broadcast %3 : vector<32x1xf32> to vector<32x128xf32>
    %5 = arith.addf %2, %4 : vector<32x128xf32>
    %cst_5 = arith.constant 0.000000e+00 : f32
    %6 = vector.broadcast %cst_5 : f32 to vector<32x128xf32>
    %7 = arith.maximumf %5, %6 : vector<32x128xf32>
    %c0_6 = arith.constant 0 : index
    %c0_7 = arith.constant 0 : index
    %8 = vector.load %arg4[%c0_6, %c0_7] : memref<32x32xf32, #tpu.memory_space<vmem>>, vector<32x32xf32>
    %cst_8 = arith.constant dense<0.000000e+00> : vector<32x128xf32>
    %9 = tpu.matmul %8, %7, %cst_8 {dimension_numbers = #tpu.dot_dimension_numbers<[1], [0], [0], [1], [0, 0, 1, 1], [], []>} : vector<32x32xf32>, vector<32x128xf32>, vector<32x128xf32> -> vector<32x128xf32>
    %c0_9 = arith.constant 0 : index
    %c0_10 = arith.constant 0 : index
    %10 = vector.load %arg5[%c0_9, %c0_10] : memref<32x1xf32, #tpu.memory_space<vmem>>, vector<32x1xf32>
    %11 = vector.broadcast %10 : vector<32x1xf32> to vector<32x128xf32>
    %12 = arith.addf %9, %11 : vector<32x128xf32>
    %cst_11 = arith.constant 0.000000e+00 : f32
    %13 = vector.broadcast %cst_11 : f32 to vector<32x128xf32>
    %14 = arith.maximumf %12, %13 : vector<32x128xf32>
    %c0_12 = arith.constant 0 : index
    %c0_13 = arith.constant 0 : index
    %15 = vector.load %arg6[%c0_12, %c0_13] : memref<1x32xf32, #tpu.memory_space<vmem>>, vector<1x32xf32>
    %cst_14 = arith.constant dense<0.000000e+00> : vector<1x128xf32>
    %16 = tpu.matmul %15, %14, %cst_14 {dimension_numbers = #tpu.dot_dimension_numbers<[1], [0], [0], [1], [0, 0, 1, 1], [], []>} : vector<1x32xf32>, vector<32x128xf32>, vector<1x128xf32> -> vector<1x128xf32>
    %c0_15 = arith.constant 0 : index
    %c0_16 = arith.constant 0 : index
    %17 = vector.load %arg7[%c0_15, %c0_16] : memref<1x1xf32, #tpu.memory_space<vmem>>, vector<1x1xf32>
    %18 = vector.broadcast %17 : vector<1x1xf32> to vector<1x128xf32>
    %19 = arith.addf %16, %18 : vector<1x128xf32>
    %c0_17 = arith.constant 0 : index
    %c0_18 = arith.constant 0 : index
    %20 = vector.load %arg8[%c0_17, %c0_18] : memref<1x128xf32, #tpu.memory_space<vmem>>, vector<1x128xf32>
    tpu.vector_store %arg8[%c0_17, %c0_18], %19 {strides = array<i32>} : memref<1x128xf32, #tpu.memory_space<vmem>>, vector<1x128xf32>,
    return
  }
  func.func @transform_0(%arg0: i32) -> (i32, i32) {
    %c0_i32 = arith.constant 0 : i32
    %c0_i32_0 = arith.constant 0 : i32
    return %c0_i32, %arg0 : i32, i32
  }
  func.func @transform_1(%arg0: i32) -> (i32, i32) {
    %c0_i32 = arith.constant 0 : i32
    %c0_i32_0 = arith.constant 0 : i32
    %c0_i32_1 = arith.constant 0 : i32
    return %c0_i32, %c0_i32_0 : i32, i32
  }
  func.func @transform_2(%arg0: i32) -> (i32, i32) {
    %c0_i32 = arith.constant 0 : i32
    %c0_i32_0 = arith.constant 0 : i32
    %c0_i32_1 = arith.constant 0 : i32
    return %c0_i32, %c0_i32_0 : i32, i32
  }
  func.func @transform_3(%arg0: i32) -> (i32, i32) {
    %c0_i32 = arith.constant 0 : i32
    %c0_i32_0 = arith.constant 0 : i32
    %c0_i32_1 = arith.constant 0 : i32
    return %c0_i32, %c0_i32_0 : i32, i32
  }
  func.func @transform_4(%arg0: i32) -> (i32, i32) {
    %c0_i32 = arith.constant 0 : i32
    %c0_i32_0 = arith.constant 0 : i32
    %c0_i32_1 = arith.constant 0 : i32
    return %c0_i32, %c0_i32_0 : i32, i32
  }
  func.func @transform_5(%arg0: i32) -> (i32, i32) {
    %c0_i32 = arith.constant 0 : i32
    %c0_i32_0 = arith.constant 0 : i32
    %c0_i32_1 = arith.constant 0 : i32
    return %c0_i32, %c0_i32_0 : i32, i32
  }
  func.func @transform_6(%arg0: i32) -> (i32, i32) {
    %c0_i32 = arith.constant 0 : i32
    %c0_i32_0 = arith.constant 0 : i32
    %c0_i32_1 = arith.constant 0 : i32
    return %c0_i32, %c0_i32_0 : i32, i32
  }
  func.func @transform_7(%arg0: i32) -> (i32, i32) {
    %c0_i32 = arith.constant 0 : i32
    %c0_i32_0 = arith.constant 0 : i32
    return %c0_i32, %arg0 : i32, i32
  }
}

</mosaic_0001>

<bundles_post_ra>
// kernel: tpu_custom_call.1
= control target key start
LH: loop header
LB: loop body
LE: loop exit
PB: predicated region body
PF: predicated region fallthrough
CT: control target
= control target key end

     0   :  { %s644_s0 = inlined_call_operand.vmem [shape: f32[32,128], index: 0, kind: input, shape index: {}]   ;;  %s645_s1 = inlined_call_operand.vmem [shape: f32[32,32], index: 1, kind: input, shape index: {}]   ;;  %s646_s2 = inlined_call_operand.vmem [shape: f32[32,1], index: 2, kind: input, shape index: {}]   ;;  %s647_s3 = inlined_call_operand.hbm [shape: f32[32,32], index: 3, kind: input, shape index: {}]   ;;  %s648_s4 = inlined_call_operand.vmem [shape: f32[32,1], index: 4, kind: input, shape index: {}]   ;;  %s649_s5 = inlined_call_operand.vmem [shape: f32[1,32], index: 5, kind: input, shape index: {}]   ;;  %s650_s6 = inlined_call_operand.<no memory space> [shape: f32[1,1], index: 6, kind: input, shape index: {}]   ;;  %s651_s7 = inlined_call_operand.hbm [shape: f32[1,128], index: 7, kind: output, shape index: {}]  }
   0x1   :  { %v12_v0 = vstv %s650_s6 }
   0x2   :  { %13 = vst [vmem:[#allocation2] sm:$0x1] %v12_v0 }
   0x3   :  { %14 = vsyncpa [#allocation4], 0 }
   0x4   :  { %15 = vsyncpa [#allocation5], 0  ;;  %s528_s26 = smov [#allocation3]  }
   0x5   :  { %s27_s27 = sshll.u32 %s528_s26, 4  ;;  %s28_s27 = int_to_ptr.vmem [resolvable:$true] %s27_s27 }
   0x6   :  { %s492_s28 = scalar_lea.vmem %s28_s27, 512  ;;  %p497_p1 = scmp.lt.s32.totalorder %s28_s27, %s28_s27 }
   0x7   :  { %p493_p0 = scmp.ne.s32.totalorder %s28_s27, %s492_s28  ;;  %p498_p2 = scmp.lt.s32.totalorder %s492_s28, %s492_s28 }
   0x9   :  { %p499_p3 = por %p498_p2, %p497_p1 }
   0xb   :  { %p500_p4 = pnand %p499_p3, %p493_p0 }
   0xd   :  { %503 = shalt.err (!%p500_p4)
}
   0xe   :  { %s529_s29 = smov 128   ;;  %s530_s30 = smov 8  }
   0xf   :  { %33 = dma.hbm_to_vmem [thread:$0]  %s647_s3, 512, %s28_s27, [#allocation4], %s529_s29, %s529_s29, %s530_s30  }
  0x10   :  { %524 = dma.done.wait [#allocation4], 512  }
  0x11   :  { %525 = vsyncadd [#allocation4], 4294966784  ;;  %v531_v1 = vmov 0   ;;  %vm75_vm0 = vcmask 261120   ;;  %v46_v2 = vld [vmem:[%s644_s0 + $0x18] sm:$0xff]  ;;  %v45_v3 = vld [vmem:[%s644_s0 + $0x10] sm:$0xff]  ;;  %v313_v57 = vlaneseq }
  0x12   :  { %482 = vset.pattern.permute.xlu0 %v531_v1  ;;  %483 = vset.pattern.permute.xlu1 %v531_v1  ;;  %v47_v4 = vld [vmem:[%s645_s1] sm:$0xff]  ;;  %v44_v5 = vld [vmem:[%s644_s0 + $0x8] sm:$0xff]  ;;  %v54_v6 = vld [vmem:[%s646_s2 + $0x18] sm:$0xff]  ;;  %v532_v39 = vmov 0.0   ;;  %vm533_vm1 = vmmov 0   ;;  %s534_s14 = smov [#allocation6]  }
  0x13   :  { %436 = vmatprep.subr.mxu0 %v46_v2  ;;  %444 = vmatprep.mubr.msk.f32.mxu0 %vm75_vm0, %v47_v4  ;;  %v52_v7 = vld [vmem:[%s646_s2 + $0x8] sm:$0xff]  ;;  %v43_v8 = vld [vmem:[%s644_s0] sm:$0xff]  ;;  %v53_v9 = vld [vmem:[%s646_s2 + $0x10] sm:$0xff]  ;;  %v314_v58 = vshrl.u32 %v313_v57, 7  ;;  %s397_s3 = sshll.u32 %s534_s14, 4  ;;  %s398_s3 = int_to_ptr.vmem [resolvable:$true] %s397_s3 }
  0x14   :  { %437 = vmatpush3.msra.mxu0 %v46_v2  ;;  %72 = vperm.xlu0 %482, %v54_v6   ;;  %v51_v10 = vld [vmem:[%s646_s2] sm:$0xff]  ;;  %v48_v11 = vld [vmem:[%s645_s1 + $0x8] sm:$0xff]  ;;  %v49_v12 = vld [vmem:[%s645_s1 + $0x10] sm:$0xff]  ;;  %s504_s15 = scalar_lea.vmem %s398_s3, 16  ;;  %s508_s16 = scalar_lea.vmem %s398_s3, 32 }
  0x15   :  { %438 = vmatprep.subr.mxu0 %v45_v3  ;;  %62 = vperm.xlu1 %483, %v52_v7   ;;  %v184_v13 = vld [vmem:[%s648_s4 + $0x18] sm:$0xff]  ;;  %v183_v14 = vld [vmem:[%s648_s4 + $0x10] sm:$0xff]  ;;  %v182_v16 = vld [vmem:[%s648_s4 + $0x8] sm:$0xff]  ;;  %v315_v59 = vsub.s32 0, %v314_v58  ;;  %p505_p5 = scmp.ne.s32.totalorder %s398_s3, %s504_s15  ;;  %p509_p6 = scmp.lt.s32.totalorder %s398_s3, %s398_s3 }
  0x16   :  { %439 = vmatpush3.msra.mxu0 %v45_v3  ;;  %v50_v15 = vld [vmem:[%s645_s1 + $0x18] sm:$0xff]  ;;  %v181_v17 = vld [vmem:[%s648_s4] sm:$0xff]  ;;  %v178_v36 = vld [vmem:[#allocation3 + $0x8] sm:$0xff]  ;;  %p510_p7 = scmp.lt.s32.totalorder %s508_s16, %s504_s15 }
  0x17   :  { %440 = vmatprep.subr.mxu0 %v44_v5  ;;  %v307_v18 = vld [vmem:[#allocation2] sm:$0x1]  ;;  %v177_v19 = vld [vmem:[#allocation3] sm:$0xff]  ;;  %v179_v37 = vld [vmem:[#allocation3 + $0x10] sm:$0xff] }
  0x18   :  { %441 = vmatpush3.msra.mxu0 %v44_v5  ;;  %67 = vperm.xlu0 %482, %v53_v9   ;;  %v180_v38 = vld [vmem:[#allocation3 + $0x18] sm:$0xff]  ;;  %p511_p8 = por %p510_p7, %p509_p6 }
  0x19   :  { %442 = vmatprep.subr.mxu0 %v43_v8  ;;  %57 = vperm.xlu1 %483, %v51_v10   ;;  %v306_v56 = vld [vmem:[%s649_s5] sm:$0x1] }
  0x1a   :  { %443 = vmatpush3.msra.mxu0 %v43_v8  ;;  %458 = vmatprep.mubr.msk.f32.mxu1 %vm75_vm0, %v177_v19  ;;  %p512_p9 = pnand %p511_p8, %p505_p5 }
  0x1b   :  { %445 = vmatmul.mubr.msk.f32.vlgmr.msra.gmra.mxu0 %vm75_vm0, %v48_v11  ;;  %464 = vmatprep.subr.mxu0 %v532_v39 }
  0x1c   :  { %447 = vmatprep.mubr.msk.f32.mxu0 %vm75_vm0, %v49_v12  ;;  %202 = vperm.xlu0 %482, %v184_v13  }
  0x1d   :  { %197 = vperm.xlu1 %483, %v183_v14  }
  0x1f   :  { %448 = vmatmul.mubr.msk.f32.gmra.mxu0 %vm75_vm0, %v50_v15 }
  0x20   :  { %192 = vperm.xlu0 %482, %v182_v16   ;;  %472 = vmatprep.mubr.msk.f32.mxu0 %vm533_vm1, %v532_v39 }
  0x21   :  { %187 = vperm.xlu1 %483, %v181_v17  }
  0x24   :  { %310 = vperm.xlu0 %482, %v307_v18  }
  0x8f   :  { %v73_v20 = vpop.permute.xlu0 %72 }
  0x90   :  { %v63_v22 = vpop.permute.xlu1 %62 }
  0x93   :  { %v68_v26 = vpop.permute.xlu0 %67 }
  0x94   :  { %v58_v31 = vpop.permute.xlu1 %57 }
  0x97   :  { %v203_v40 = vpop.permute.xlu0 %202 }
  0x98   :  { %v198_v42 = vpop.permute.xlu1 %197 }
  0x9b   :  { %v193_v46 = vpop.permute.xlu0 %192 }
  0x9c   :  { %v188_v51 = vpop.permute.xlu1 %187 }
  0x9f   :  { %v311_v60 = vpop.permute.xlu0 %310 }
  0xa0   :  { %v316_v61 = vrot.slane %v311_v60, %v315_v59 }
  0xdb   :  { %v446_v21 = vpop.f32.mrf.mxu0 }
  0xdc   :  { %v160_v28 = vadd.f32 %v446_v21, %v63_v22 }
  0xdd   :  { %v154_v23 = vpop.f32.mrf.mxu0 }
  0xde   :  { %v155_v32 = vadd.f32 %v154_v23, %v58_v31  ;;  %v174_v34 = vmax.f32 %v160_v28, 0.0 }
  0xdf   :  { %v449_v24 = vpop.f32.mrf.mxu0 }
  0xe0   :  { %v170_v25 = vadd.f32 %v449_v24, %v73_v20  ;;  %v173_v35 = vmax.f32 %v155_v32, 0.0 }
  0xe1   :  { %v164_v27 = vpop.f32.mrf.mxu0 }
  0xe2   :  { %v176_v29 = vmax.f32 %v170_v25, 0.0  ;;  %v165_v30 = vadd.f32 %v164_v27, %v68_v26 }
  0xe4   :  { %v175_v33 = vmax.f32 %v165_v30, 0.0  ;;  %450 = vmatprep.subr.mxu1 %v176_v29 }
  0xe5   :  { %451 = vmatpush3.msra.mxu1 %v176_v29 }
  0xe6   :  { %452 = vmatprep.subr.mxu1 %v175_v33 }
  0xe7   :  { %453 = vmatpush3.msra.mxu1 %v175_v33 }
  0xe8   :  { %454 = vmatprep.subr.mxu1 %v174_v34 }
  0xe9   :  { %455 = vmatpush3.msra.mxu1 %v174_v34 }
  0xea   :  { %456 = vmatprep.subr.mxu1 %v173_v35 }
  0xeb   :  { %457 = vmatpush3.msra.mxu1 %v173_v35 }
  0xec   :  { %459 = vmatmul.mubr.msk.f32.vlgmr.msra.gmra.mxu1 %vm75_vm0, %v178_v36 }
  0xed   :  { %461 = vmatprep.mubr.msk.f32.mxu1 %vm75_vm0, %v179_v37 }
  0xf0   :  { %462 = vmatmul.mubr.msk.f32.gmra.mxu1 %vm75_vm0, %v180_v38 }
 0x1ac   :  { %v460_v41 = vpop.f32.mrf.mxu1 }
 0x1ad   :  { %v289_v48 = vadd.f32 %v460_v41, %v193_v46 }
 0x1ae   :  { %v283_v43 = vpop.f32.mrf.mxu1 }
 0x1af   :  { %v284_v52 = vadd.f32 %v283_v43, %v188_v51  ;;  %v303_v54 = vmax.f32 %v289_v48, 0.0 }
 0x1b0   :  { %v463_v44 = vpop.f32.mrf.mxu1 }
 0x1b1   :  { %v299_v45 = vadd.f32 %v463_v44, %v203_v40  ;;  %v302_v55 = vmax.f32 %v284_v52, 0.0 }
 0x1b2   :  { %v293_v47 = vpop.f32.mrf.mxu1 }
 0x1b3   :  { %v305_v49 = vmax.f32 %v299_v45, 0.0  ;;  %v294_v50 = vadd.f32 %v293_v47, %v198_v42 }
 0x1b5   :  { %v304_v53 = vmax.f32 %v294_v50, 0.0  ;;  %465 = vmatpush3.msra.mxu0 %v305_v49 }
 0x1b6   :  { %466 = vmatprep.subr.mxu0 %v532_v39 }
 0x1b7   :  { %467 = vmatpush3.msra.mxu0 %v304_v53 }
 0x1b8   :  { %468 = vmatprep.subr.mxu0 %v532_v39 }
 0x1b9   :  { %469 = vmatpush3.msra.mxu0 %v303_v54 }
 0x1ba   :  { %470 = vmatprep.subr.mxu0 %v532_v39 }
 0x1bb   :  { %471 = vmatpush3.msra.mxu0 %v302_v55 }
 0x1bc   :  { %473 = vmatmul.mubr.msk.f32.vlgmr.msra.gmra.mxu0 %vm75_vm0, %v306_v56 }
 0x27c   :  { %v386_v62 = vpop.f32.mrf.mxu0 }
 0x27d   :  { %v387_v63 = vadd.f32 %v386_v62, %v316_v61 }
 0x27e   :  { %v474_v0 = vpop.f32.mrf.mxu0 }
 0x27f   :  { %390 = vst [vmem:[#allocation6] sm:$0x1] %v387_v63 }
 0x280   :  { %515 = shalt.err (!%p512_p9)
}
 0x281   :  { %400 = dma.vmem_to_hbm [thread:$0]  %s398_s3, 16, %s651_s7, [#allocation5]  }
 0x282   :  { %526 = dma.done.wait [#allocation5], 16  }
 0x283   :  { %527 = vsyncadd [#allocation5], 4294967280 }
 0x284   :  { %404 = vsyncpa [#allocation4], 1 }
 0x285   :  { %405 = vsyncpa [#allocation5], 1 }

</bundles_post_ra>
